<compile_context>
chip_gen: v7x
topology: tpu7x:2x2x1
jax: 0.10.0
libtpu: 0.0.40
codegen_flags: <defaults>
</compile_context>

<pallas_src>
import functools
import math

import jax
import jax.numpy as jnp
from jax.experimental import pallas as pl
from jax.experimental.pallas import tpu as pltpu


def _quantile_utility_kernel(x_ref, o_ref, *, beta, maximize, num_samples):
    # x_ref / o_ref: (S, TL) VMEM tiles. Stream per-sample slices to keep the
    # register live-set at ~one (1, TL) f32 row instead of the full S-tile.
    inv_s = 1.0 / float(num_samples)

    # Pass 1: mean over the sample axis, accumulated in f32.
    acc = x_ref[pl.ds(0, 1), :].astype(jnp.float32)
    for s in range(1, num_samples):
        acc = acc + x_ref[pl.ds(s, 1), :].astype(jnp.float32)
    mean = acc * inv_s                      # (1, TL) f32
    base = mean if maximize else -mean      # matches PyTorch maximize flag

    # Pass 2: per-sample utility, written lane-dense per S-slice.
    for s in range(num_samples):
        x_s = x_ref[pl.ds(s, 1), :].astype(jnp.float32)
        o_ref[pl.ds(s, 1), :] = (base + beta * jnp.abs(x_s - mean)).astype(o_ref.dtype)


def _pick_tile(l_padded, max_lanes):
    # Largest multiple of 128 that divides l_padded and is <= max_lanes.
    m = l_padded // 128
    d = max(1, min(m, max_lanes // 128))
    while d > 1 and m % d != 0:
        d -= 1
    return d * 128


def quantile_utility(samples, beta=0.5, maximize=True, *, block_bytes=None):
    """samples: (S, ...) array. Returns utility of the same shape/dtype."""
    orig_shape = samples.shape
    S = orig_shape[0]
    L = int(math.prod(orig_shape[1:])) if len(orig_shape) > 1 else 1
    x = samples.reshape(S, L)
    itemsize = samples.dtype.itemsize

    # VMEM capacity of the current generation (fallback: v7x's 64 MiB per TC).
    try:
        vmem_cap = int(pltpu.get_tpu_info().vmem_capacity_bytes)
    except Exception:  # pragma: no cover - defensive fallback
        vmem_cap = 64 * 1024 * 1024

    if block_bytes is None:
        # One (S, TL) input block; in+out, double-buffered => ~4x block bytes
        # live. Keep that well under VMEM on every generation.
        block_bytes = min(6 * 1024 * 1024, vmem_cap // 8)
    max_lanes = max(128, block_bytes // (S * itemsize))

    kernel = functools.partial(
        _quantile_utility_kernel,
        beta=float(beta),
        maximize=bool(maximize),
        num_samples=S,
    )

    if L <= max_lanes:
        # Small problem: one grid step covering the whole array (no step
        # overhead, no divisibility constraints since block == full dims).
        x_run, L_run, tl, grid = x, L, L, (1,)
    else:
        # Pad the flattened axis to a multiple of 128 lanes (rarely needed),
        # then pick the largest lane-dense tile that divides it.
        pad = (-L) % 128
        x_run = jnp.pad(x, ((0, 0), (0, pad))) if pad else x
        L_run = L + pad
        tl = _pick_tile(L_run, max_lanes)
        grid = (L_run // tl,)

    vmem_limit = int(min(vmem_cap * 3 // 4, 96 * 1024 * 1024))

    out = pl.pallas_call(
        kernel,
        out_shape=jax.ShapeDtypeStruct((S, L_run), samples.dtype),
        grid_spec=pltpu.PrefetchScalarGridSpec(
            num_scalar_prefetch=0,
            grid=grid,
            in_specs=[pl.BlockSpec((S, tl), lambda i: (0, i))],
            out_specs=pl.BlockSpec((S, tl), lambda i: (0, i)),
        ),
        compiler_params=pltpu.CompilerParams(
            dimension_semantics=("parallel",),
            vmem_limit_bytes=vmem_limit,
        ),
        cost_estimate=pl.CostEstimate(
            flops=5 * S * L_run,
            transcendentals=0,
            bytes_accessed=2 * S * L_run * itemsize,
        ),
    )(x_run)

    if L_run != L:
        out = out[:, :L]
    return out.reshape(orig_shape)


def quantile_utility_ref(samples, beta=0.5, maximize=True):
    x = samples.astype(jnp.float32)
    mean = jnp.mean(x, axis=0, keepdims=True)
    dev = beta * jnp.abs(x - mean)
    out = mean + dev if maximize else -mean + dev
    return out.astype(samples.dtype)


if __name__ == "__main__":
    key = jax.random.PRNGKey(0)
    # num_samples=8 posterior draws, batch=32 candidates, q=128 joint points.
    S, N, Q = 8, 32, 128
    samples = jax.random.normal(key, (S, N, Q), dtype=jnp.float32)
    beta = 0.5  # matches QuantileUtility(beta=0.5)

    # Default path (small problem => single grid step covering the array).
    out = jax.block_until_ready(quantile_utility(samples, beta=beta, maximize=True))
    ref = quantile_utility_ref(samples, beta=beta, maximize=True)
    assert out.shape == samples.shape and out.dtype == samples.dtype
    assert jnp.allclose(out, ref, atol=1e-5, rtol=1e-5)

    # Exercise the tiled multi-step path (and maximize=False) by forcing a
    # small per-block budget.
    out_t = jax.block_until_ready(
        quantile_utility(samples, beta=beta, maximize=False, block_bytes=32 * 1024)
    )
    ref_t = quantile_utility_ref(samples, beta=beta, maximize=False)
    assert jnp.allclose(out_t, ref_t, atol=1e-5, rtol=1e-5)

    print("KERNEL_OK")
</pallas_src>

<mosaic_0001>
module attributes {stable_mosaic.version = 11 : i64} {
  func.func @_quantile_utility_kernel(%arg0: i32, %arg1: memref<8x4096xf32, #tpu.memory_space<vmem>>, %arg2: memref<8x4096xf32, #tpu.memory_space<vmem>>) attributes {dimension_semantics = [#tpu.dimension_semantics<parallel>], iteration_bounds = array<i64: 1>, scalar_prefetch = 0 : i64, scratch_operands = 0 : i64, tpu.core_type = #tpu.core_type<tc>, window_params = [{transform_indices = @transform_0, window_bounds = array<i64: 8, 4096>}, {transform_indices = @transform_1, window_bounds = array<i64: 8, 4096>}]} {
    %c0 = arith.constant 0 : index
    %c0_0 = arith.constant 0 : index
    %0 = vector.load %arg1[%c0, %c0_0] : memref<8x4096xf32, #tpu.memory_space<vmem>>, vector<1x4096xf32>
    %c1 = arith.constant 1 : index
    %c0_1 = arith.constant 0 : index
    %1 = vector.load %arg1[%c1, %c0_1] : memref<8x4096xf32, #tpu.memory_space<vmem>>, vector<1x4096xf32>
    %2 = arith.addf %0, %1 : vector<1x4096xf32>
    %c2 = arith.constant 2 : index
    %c0_2 = arith.constant 0 : index
    %3 = vector.load %arg1[%c2, %c0_2] : memref<8x4096xf32, #tpu.memory_space<vmem>>, vector<1x4096xf32>
    %4 = arith.addf %2, %3 : vector<1x4096xf32>
    %c3 = arith.constant 3 : index
    %c0_3 = arith.constant 0 : index
    %5 = vector.load %arg1[%c3, %c0_3] : memref<8x4096xf32, #tpu.memory_space<vmem>>, vector<1x4096xf32>
    %6 = arith.addf %4, %5 : vector<1x4096xf32>
    %c4 = arith.constant 4 : index
    %c0_4 = arith.constant 0 : index
    %7 = vector.load %arg1[%c4, %c0_4] : memref<8x4096xf32, #tpu.memory_space<vmem>>, vector<1x4096xf32>
    %8 = arith.addf %6, %7 : vector<1x4096xf32>
    %c5 = arith.constant 5 : index
    %c0_5 = arith.constant 0 : index
    %9 = vector.load %arg1[%c5, %c0_5] : memref<8x4096xf32, #tpu.memory_space<vmem>>, vector<1x4096xf32>
    %10 = arith.addf %8, %9 : vector<1x4096xf32>
    %c6 = arith.constant 6 : index
    %c0_6 = arith.constant 0 : index
    %11 = vector.load %arg1[%c6, %c0_6] : memref<8x4096xf32, #tpu.memory_space<vmem>>, vector<1x4096xf32>
    %12 = arith.addf %10, %11 : vector<1x4096xf32>
    %c7 = arith.constant 7 : index
    %c0_7 = arith.constant 0 : index
    %13 = vector.load %arg1[%c7, %c0_7] : memref<8x4096xf32, #tpu.memory_space<vmem>>, vector<1x4096xf32>
    %14 = arith.addf %12, %13 : vector<1x4096xf32>
    %cst = arith.constant 1.250000e-01 : f32
    %15 = vector.broadcast %cst : f32 to vector<1x4096xf32>
    %16 = arith.mulf %14, %15 : vector<1x4096xf32>
    %c0_8 = arith.constant 0 : index
    %c0_9 = arith.constant 0 : index
    %17 = vector.load %arg1[%c0_8, %c0_9] : memref<8x4096xf32, #tpu.memory_space<vmem>>, vector<1x4096xf32>
    %18 = arith.subf %17, %16 : vector<1x4096xf32>
    %19 = math.absf %18 : vector<1x4096xf32>
    %cst_10 = arith.constant 5.000000e-01 : f32
    %20 = vector.broadcast %cst_10 : f32 to vector<1x4096xf32>
    %21 = arith.mulf %20, %19 : vector<1x4096xf32>
    %22 = arith.addf %16, %21 : vector<1x4096xf32>
    %c0_11 = arith.constant 0 : index
    %c0_12 = arith.constant 0 : index
    %23 = vector.load %arg2[%c0_11, %c0_12] : memref<8x4096xf32, #tpu.memory_space<vmem>>, vector<1x4096xf32>
    tpu.vector_store %arg2[%c0_11, %c0_12], %22 {strides = array<i32>} : memref<8x4096xf32, #tpu.memory_space<vmem>>, vector<1x4096xf32>,
    %c1_13 = arith.constant 1 : index
    %c0_14 = arith.constant 0 : index
    %24 = vector.load %arg1[%c1_13, %c0_14] : memref<8x4096xf32, #tpu.memory_space<vmem>>, vector<1x4096xf32>
    %25 = arith.subf %24, %16 : vector<1x4096xf32>
    %26 = math.absf %25 : vector<1x4096xf32>
    %cst_15 = arith.constant 5.000000e-01 : f32
    %27 = vector.broadcast %cst_15 : f32 to vector<1x4096xf32>
    %28 = arith.mulf %27, %26 : vector<1x4096xf32>
    %29 = arith.addf %16, %28 : vector<1x4096xf32>
    %c1_16 = arith.constant 1 : index
    %c0_17 = arith.constant 0 : index
    %30 = vector.load %arg2[%c1_16, %c0_17] : memref<8x4096xf32, #tpu.memory_space<vmem>>, vector<1x4096xf32>
    tpu.vector_store %arg2[%c1_16, %c0_17], %29 {strides = array<i32>} : memref<8x4096xf32, #tpu.memory_space<vmem>>, vector<1x4096xf32>,
    %c2_18 = arith.constant 2 : index
    %c0_19 = arith.constant 0 : index
    %31 = vector.load %arg1[%c2_18, %c0_19] : memref<8x4096xf32, #tpu.memory_space<vmem>>, vector<1x4096xf32>
    %32 = arith.subf %31, %16 : vector<1x4096xf32>
    %33 = math.absf %32 : vector<1x4096xf32>
    %cst_20 = arith.constant 5.000000e-01 : f32
    %34 = vector.broadcast %cst_20 : f32 to vector<1x4096xf32>
    %35 = arith.mulf %34, %33 : vector<1x4096xf32>
    %36 = arith.addf %16, %35 : vector<1x4096xf32>
    %c2_21 = arith.constant 2 : index
    %c0_22 = arith.constant 0 : index
    %37 = vector.load %arg2[%c2_21, %c0_22] : memref<8x4096xf32, #tpu.memory_space<vmem>>, vector<1x4096xf32>
    tpu.vector_store %arg2[%c2_21, %c0_22], %36 {strides = array<i32>} : memref<8x4096xf32, #tpu.memory_space<vmem>>, vector<1x4096xf32>,
    %c3_23 = arith.constant 3 : index
    %c0_24 = arith.constant 0 : index
    %38 = vector.load %arg1[%c3_23, %c0_24] : memref<8x4096xf32, #tpu.memory_space<vmem>>, vector<1x4096xf32>
    %39 = arith.subf %38, %16 : vector<1x4096xf32>
    %40 = math.absf %39 : vector<1x4096xf32>
    %cst_25 = arith.constant 5.000000e-01 : f32
    %41 = vector.broadcast %cst_25 : f32 to vector<1x4096xf32>
    %42 = arith.mulf %41, %40 : vector<1x4096xf32>
    %43 = arith.addf %16, %42 : vector<1x4096xf32>
    %c3_26 = arith.constant 3 : index
    %c0_27 = arith.constant 0 : index
    %44 = vector.load %arg2[%c3_26, %c0_27] : memref<8x4096xf32, #tpu.memory_space<vmem>>, vector<1x4096xf32>
    tpu.vector_store %arg2[%c3_26, %c0_27], %43 {strides = array<i32>} : memref<8x4096xf32, #tpu.memory_space<vmem>>, vector<1x4096xf32>,
    %c4_28 = arith.constant 4 : index
    %c0_29 = arith.constant 0 : index
    %45 = vector.load %arg1[%c4_28, %c0_29] : memref<8x4096xf32, #tpu.memory_space<vmem>>, vector<1x4096xf32>
    %46 = arith.subf %45, %16 : vector<1x4096xf32>
    %47 = math.absf %46 : vector<1x4096xf32>
    %cst_30 = arith.constant 5.000000e-01 : f32
    %48 = vector.broadcast %cst_30 : f32 to vector<1x4096xf32>
    %49 = arith.mulf %48, %47 : vector<1x4096xf32>
    %50 = arith.addf %16, %49 : vector<1x4096xf32>
    %c4_31 = arith.constant 4 : index
    %c0_32 = arith.constant 0 : index
    %51 = vector.load %arg2[%c4_31, %c0_32] : memref<8x4096xf32, #tpu.memory_space<vmem>>, vector<1x4096xf32>
    tpu.vector_store %arg2[%c4_31, %c0_32], %50 {strides = array<i32>} : memref<8x4096xf32, #tpu.memory_space<vmem>>, vector<1x4096xf32>,
    %c5_33 = arith.constant 5 : index
    %c0_34 = arith.constant 0 : index
    %52 = vector.load %arg1[%c5_33, %c0_34] : memref<8x4096xf32, #tpu.memory_space<vmem>>, vector<1x4096xf32>
    %53 = arith.subf %52, %16 : vector<1x4096xf32>
    %54 = math.absf %53 : vector<1x4096xf32>
    %cst_35 = arith.constant 5.000000e-01 : f32
    %55 = vector.broadcast %cst_35 : f32 to vector<1x4096xf32>
    %56 = arith.mulf %55, %54 : vector<1x4096xf32>
    %57 = arith.addf %16, %56 : vector<1x4096xf32>
    %c5_36 = arith.constant 5 : index
    %c0_37 = arith.constant 0 : index
    %58 = vector.load %arg2[%c5_36, %c0_37] : memref<8x4096xf32, #tpu.memory_space<vmem>>, vector<1x4096xf32>
    tpu.vector_store %arg2[%c5_36, %c0_37], %57 {strides = array<i32>} : memref<8x4096xf32, #tpu.memory_space<vmem>>, vector<1x4096xf32>,
    %c6_38 = arith.constant 6 : index
    %c0_39 = arith.constant 0 : index
    %59 = vector.load %arg1[%c6_38, %c0_39] : memref<8x4096xf32, #tpu.memory_space<vmem>>, vector<1x4096xf32>
    %60 = arith.subf %59, %16 : vector<1x4096xf32>
    %61 = math.absf %60 : vector<1x4096xf32>
    %cst_40 = arith.constant 5.000000e-01 : f32
    %62 = vector.broadcast %cst_40 : f32 to vector<1x4096xf32>
    %63 = arith.mulf %62, %61 : vector<1x4096xf32>
    %64 = arith.addf %16, %63 : vector<1x4096xf32>
    %c6_41 = arith.constant 6 : index
    %c0_42 = arith.constant 0 : index
    %65 = vector.load %arg2[%c6_41, %c0_42] : memref<8x4096xf32, #tpu.memory_space<vmem>>, vector<1x4096xf32>
    tpu.vector_store %arg2[%c6_41, %c0_42], %64 {strides = array<i32>} : memref<8x4096xf32, #tpu.memory_space<vmem>>, vector<1x4096xf32>,
    %c7_43 = arith.constant 7 : index
    %c0_44 = arith.constant 0 : index
    %66 = vector.load %arg1[%c7_43, %c0_44] : memref<8x4096xf32, #tpu.memory_space<vmem>>, vector<1x4096xf32>
    %67 = arith.subf %66, %16 : vector<1x4096xf32>
    %68 = math.absf %67 : vector<1x4096xf32>
    %cst_45 = arith.constant 5.000000e-01 : f32
    %69 = vector.broadcast %cst_45 : f32 to vector<1x4096xf32>
    %70 = arith.mulf %69, %68 : vector<1x4096xf32>
    %71 = arith.addf %16, %70 : vector<1x4096xf32>
    %c7_46 = arith.constant 7 : index
    %c0_47 = arith.constant 0 : index
    %72 = vector.load %arg2[%c7_46, %c0_47] : memref<8x4096xf32, #tpu.memory_space<vmem>>, vector<1x4096xf32>
    tpu.vector_store %arg2[%c7_46, %c0_47], %71 {strides = array<i32>} : memref<8x4096xf32, #tpu.memory_space<vmem>>, vector<1x4096xf32>,
    return
  }
  func.func @transform_0(%arg0: i32) -> (i32, i32) {
    %c0_i32 = arith.constant 0 : i32
    %c0_i32_0 = arith.constant 0 : i32
    return %c0_i32, %arg0 : i32, i32
  }
  func.func @transform_1(%arg0: i32) -> (i32, i32) {
    %c0_i32 = arith.constant 0 : i32
    %c0_i32_0 = arith.constant 0 : i32
    return %c0_i32, %arg0 : i32, i32
  }
}

</mosaic_0001>

<bundles_post_ra>
// kernel: tpu_custom_call.1
= control target key start
LH: loop header
LB: loop body
LE: loop exit
PB: predicated region body
PF: predicated region fallthrough
CT: control target
= control target key end

     0   :  { %6 = vsyncpa [#allocation3], 0  ;;  %s676_s0 = inlined_call_operand.hbm [shape: f32[8,4096], index: 0, kind: input, shape index: {}]   ;;  %s677_s1 = inlined_call_operand.hbm [shape: f32[8,4096], index: 1, kind: output, shape index: {}]  }
   0x1   :  { %7 = vsyncpa [#allocation4], 0  ;;  %s552_s6 = smov [#allocation2]   ;;  %s504_s10 = scalar_lea.hbm %s676_s0, 4096 }
   0x2   :  { %s14_s7 = sshll.u32 %s552_s6, 4  ;;  %p505_p0 = scmp.ne.s32.totalorder %s676_s0, %s504_s10  ;;  %s15_s7 = int_to_ptr.vmem [resolvable:$true] %s14_s7 }
   0x3   :  { %p508_p1 = scmp.lt.u32.totalorder %s504_s10, %s676_s0 }
   0x5   :  { %p510_p2 = pnand %p508_p1, %p505_p0 }
   0x7   :  { %513 = shalt.err (!%p510_p2)
}
   0x8   :  { %s514_s15 = scalar_lea.vmem %s15_s7, 4096  ;;  %p519_p4 = scmp.lt.s32.totalorder %s15_s7, %s15_s7 }
   0x9   :  { %p515_p3 = scmp.ne.s32.totalorder %s15_s7, %s514_s15  ;;  %p520_p5 = scmp.lt.s32.totalorder %s514_s15, %s514_s15 }
   0xb   :  { %p521_p6 = por %p520_p5, %p519_p4 }
   0xd   :  { %p522_p7 = pnand %p521_p6, %p515_p3 }
   0xf   :  { %525 = shalt.err (!%p522_p7)
}
  0x10   :  { %17 = dma.hbm_to_vmem [thread:$0]  %s676_s0, 4096, %s15_s7, [#allocation3]  }
  0x11   :  { %548 = dma.done.wait [#allocation3], 4096  }
  0x12   :  { %549 = vsyncadd [#allocation3], 4294963200  ;;  %v21_v0 = vld [vmem:[#allocation2] ss:$8 sm:$0xf]  ;;  %s553_s0 = smov [#allocation5]  }
  0x13   :  { %v22_v1 = vld [vmem:[#allocation2] ss:$8 sm:$0xf0]  ;;  %v37_v3 = vld [vmem:[#allocation2 + $0x1] ss:$8 sm:$0xf] }
  0x14   :  { %v576_v2 = vor.u32 %v22_v1, %v21_v0  ;;  %v38_v4 = vld [vmem:[#allocation2 + $0x1] ss:$8 sm:$0xf0]  ;;  %v57_v6 = vld [vmem:[#allocation2 + $0x2] ss:$8 sm:$0xf] }
  0x15   :  { %v39_v5 = vor.u32 %v38_v4, %v37_v3  ;;  %v58_v7 = vld [vmem:[#allocation2 + $0x2] ss:$8 sm:$0xf0]  ;;  %v77_v9 = vld [vmem:[#allocation2 + $0x3] ss:$8 sm:$0xf] }
  0x16   :  { %v59_v8 = vor.u32 %v58_v7, %v57_v6  ;;  %v78_v10 = vld [vmem:[#allocation2 + $0x3] ss:$8 sm:$0xf0]  ;;  %v97_v13 = vld [vmem:[#allocation2 + $0x4] ss:$8 sm:$0xf] }
  0x17   :  { %v52_v11 = vadd.f32 %v39_v5, %v576_v2  ;;  %v79_v12 = vor.u32 %v78_v10, %v77_v9  ;;  %v98_v14 = vld [vmem:[#allocation2 + $0x4] ss:$8 sm:$0xf0]  ;;  %v117_v15 = vld [vmem:[#allocation2 + $0x5] ss:$8 sm:$0xf] }
  0x18   :  { %v118_v16 = vld [vmem:[#allocation2 + $0x5] ss:$8 sm:$0xf0]  ;;  %v99_v18 = vor.u32 %v98_v14, %v97_v13  ;;  %v137_v19 = vld [vmem:[#allocation2 + $0x6] ss:$8 sm:$0xf] }
  0x19   :  { %v72_v17 = vadd.f32 %v59_v8, %v52_v11  ;;  %v138_v20 = vld [vmem:[#allocation2 + $0x6] ss:$8 sm:$0xf0]  ;;  %v157_v21 = vld [vmem:[#allocation2 + $0x7] ss:$8 sm:$0xf]  ;;  %v119_v24 = vor.u32 %v118_v16, %v117_v15 }
  0x1a   :  { %v158_v22 = vld [vmem:[#allocation2 + $0x7] ss:$8 sm:$0xf0]  ;;  %v25_v25 = vld [vmem:[#allocation2 + $0x40] ss:$8 sm:$0xf]  ;;  %v139_v31 = vor.u32 %v138_v20, %v137_v19 }
  0x1b   :  { %v92_v23 = vadd.f32 %v79_v12, %v72_v17  ;;  %v26_v26 = vld [vmem:[#allocation2 + $0x40] ss:$8 sm:$0xf0]  ;;  %v41_v28 = vld [vmem:[#allocation2 + $0x41] ss:$8 sm:$0xf]  ;;  %v159_v39 = vor.u32 %v158_v22, %v157_v21 }
  0x1c   :  { %v579_v27 = vor.u32 %v26_v26, %v25_v25  ;;  %v42_v29 = vld [vmem:[#allocation2 + $0x41] ss:$8 sm:$0xf0]  ;;  %v61_v33 = vld [vmem:[#allocation2 + $0x42] ss:$8 sm:$0xf] }
  0x1d   :  { %v112_v30 = vadd.f32 %v99_v18, %v92_v23  ;;  %v43_v32 = vor.u32 %v42_v29, %v41_v28  ;;  %v62_v34 = vld [vmem:[#allocation2 + $0x42] ss:$8 sm:$0xf0]  ;;  %v81_v36 = vld [vmem:[#allocation2 + $0x43] ss:$8 sm:$0xf] }
  0x1e   :  { %v63_v35 = vor.u32 %v62_v34, %v61_v33  ;;  %v82_v37 = vld [vmem:[#allocation2 + $0x43] ss:$8 sm:$0xf0]  ;;  %v101_v42 = vld [vmem:[#allocation2 + $0x44] ss:$8 sm:$0xf] }
  0x1f   :  { %v132_v38 = vadd.f32 %v119_v24, %v112_v30  ;;  %v53_v40 = vadd.f32 %v43_v32, %v579_v27  ;;  %v83_v41 = vor.u32 %v82_v37, %v81_v36  ;;  %v102_v43 = vld [vmem:[#allocation2 + $0x44] ss:$8 sm:$0xf0]  ;;  %v121_v44 = vld [vmem:[#allocation2 + $0x45] ss:$8 sm:$0xf] }
  0x20   :  { %v122_v45 = vld [vmem:[#allocation2 + $0x45] ss:$8 sm:$0xf0]  ;;  %v103_v48 = vor.u32 %v102_v43, %v101_v42  ;;  %v141_v49 = vld [vmem:[#allocation2 + $0x46] ss:$8 sm:$0xf] }
  0x21   :  { %v152_v46 = vadd.f32 %v139_v31, %v132_v38  ;;  %v73_v47 = vadd.f32 %v63_v35, %v53_v40  ;;  %v142_v50 = vld [vmem:[#allocation2 + $0x46] ss:$8 sm:$0xf0]  ;;  %v161_v51 = vld [vmem:[#allocation2 + $0x47] ss:$8 sm:$0xf]  ;;  %v123_v55 = vor.u32 %v122_v45, %v121_v44 }
  0x22   :  { %v162_v52 = vld [vmem:[#allocation2 + $0x47] ss:$8 sm:$0xf0]  ;;  %v29_v56 = vld [vmem:[#allocation2 + $0x80] ss:$8 sm:$0xf]  ;;  %v143_v63 = vor.u32 %v142_v50, %v141_v49 }
  0x23   :  { %v172_v53 = vadd.f32 %v159_v39, %v152_v46  ;;  %v93_v54 = vadd.f32 %v83_v41, %v73_v47  ;;  %v30_v57 = vld [vmem:[#allocation2 + $0x80] ss:$8 sm:$0xf0]  ;;  %v45_v59 = vld [vmem:[#allocation2 + $0x81] ss:$8 sm:$0xf]  ;;  %v163_v3 = vor.u32 %v162_v52, %v161_v51 }
  0x24   :  { %v582_v58 = vor.u32 %v30_v57, %v29_v56  ;;  %v46_v60 = vld [vmem:[#allocation2 + $0x81] ss:$8 sm:$0xf0]  ;;  %v65_v1 = vld [vmem:[#allocation2 + $0x82] ss:$8 sm:$0xf] }
  0x25   :  { %v584_v61 = vmul.f32 0.125, %v172_v53  ;;  %v113_v62 = vadd.f32 %v103_v48, %v93_v54  ;;  %v47_v0 = vor.u32 %v46_v60, %v45_v59  ;;  %v66_v4 = vld [vmem:[#allocation2 + $0x82] ss:$8 sm:$0xf0]  ;;  %s493_s18 = sshll.u32 %s553_s0, 4  ;;  %s494_s18 = int_to_ptr.vmem [resolvable:$true] %s493_s18 }
  0x26   :  { %v85_v5 = vld [vmem:[#allocation2 + $0x83] ss:$8 sm:$0xf]  ;;  %v67_v9 = vor.u32 %v66_v4, %v65_v1  ;;  %v105_v11 = vld [vmem:[#allocation2 + $0x84] ss:$8 sm:$0xf]  ;;  %p531_p9 = scmp.lt.s32.totalorder %s494_s18, %s494_s18 }
  0x27   :  { %v180_v6 = vsub.f32 %v576_v2, %v584_v61  ;;  %v133_v7 = vadd.f32 %v123_v55, %v113_v62  ;;  %v54_v8 = vadd.f32 %v47_v0, %v582_v58  ;;  %v86_v10 = vld [vmem:[#allocation2 + $0x83] ss:$8 sm:$0xf0]  ;;  %v106_v13 = vld [vmem:[#allocation2 + $0x84] ss:$8 sm:$0xf0] }
  0x28   :  { %v87_v12 = vor.u32 %v86_v10, %v85_v5  ;;  %v125_v14 = vld [vmem:[#allocation2 + $0x85] ss:$8 sm:$0xf]  ;;  %v107_v18 = vor.u32 %v106_v13, %v105_v11  ;;  %v145_v20 = vld [vmem:[#allocation2 + $0x86] ss:$8 sm:$0xf] }
  0x29   :  { %v184_v15 = vand.u32 2147483647, %v180_v6  ;;  %v153_v16 = vadd.f32 %v143_v63, %v133_v7  ;;  %v74_v17 = vadd.f32 %v67_v9, %v54_v8  ;;  %v126_v19 = vld [vmem:[#allocation2 + $0x85] ss:$8 sm:$0xf0]  ;;  %s526_s19 = scalar_lea.vmem %s494_s18, 4096 }
  0x2a   :  { %v146_v21 = vld [vmem:[#allocation2 + $0x86] ss:$8 sm:$0xf0]  ;;  %v127_v2 = vor.u32 %v126_v19, %v125_v14  ;;  %v165_v25 = vld [vmem:[#allocation2 + $0x87] ss:$8 sm:$0xf]  ;;  %p527_p8 = scmp.ne.s32.totalorder %s494_s18, %s526_s19  ;;  %p532_p10 = scmp.lt.s32.totalorder %s526_s19, %s526_s19 }
  0x2b   :  { %v188_v22 = vmul.f32 0.5, %v184_v15  ;;  %v173_v23 = vadd.f32 %v163_v3, %v153_v16  ;;  %v94_v24 = vadd.f32 %v87_v12, %v74_v17  ;;  %v166_v26 = vld [vmem:[#allocation2 + $0x87] ss:$8 sm:$0xf0]  ;;  %v147_v32 = vor.u32 %v146_v21, %v145_v20 }
  0x2c   :  { %v33_v28 = vld [vmem:[#allocation2 + $0xc0] ss:$8 sm:$0xf]  ;;  %v49_v35 = vld [vmem:[#allocation2 + $0xc1] ss:$8 sm:$0xf]  ;;  %v167_v39 = vor.u32 %v166_v26, %v165_v25  ;;  %p533_p11 = por %p532_p10, %p531_p9 }
  0x2d   :  { %v192_v29 = vadd.f32 %v188_v22, %v584_v61  ;;  %v590_v30 = vmul.f32 0.125, %v173_v23  ;;  %v114_v31 = vadd.f32 %v107_v18, %v94_v24  ;;  %v34_v33 = vld [vmem:[#allocation2 + $0xc0] ss:$8 sm:$0xf0] }
  0x2e   :  { %v592_v34 = vor.u32 %v34_v33, %v33_v28  ;;  %v50_v36 = vld [vmem:[#allocation2 + $0xc1] ss:$8 sm:$0xf0]  ;;  %v69_v41 = vld [vmem:[#allocation2 + $0xc2] ss:$8 sm:$0xf]  ;;  %p534_p12 = pnand %p533_p11, %p527_p8 }
  0x2f   :  { %196 = vst [vmem:[#allocation5] ss:$8 sm:$0xf] %v192_v29  ;;  %197 = vst [vmem:[#allocation5] ss:$8 sm:$0xf0] %v192_v29  ;;  %v181_v37 = vsub.f32 %v579_v27, %v590_v30  ;;  %v134_v38 = vadd.f32 %v127_v2, %v114_v31  ;;  %v51_v40 = vor.u32 %v50_v36, %v49_v35 }
  0x30   :  { %v70_v42 = vld [vmem:[#allocation2 + $0xc2] ss:$8 sm:$0xf0]  ;;  %v89_v44 = vld [vmem:[#allocation2 + $0xc3] ss:$8 sm:$0xf] }
  0x31   :  { %v71_v43 = vor.u32 %v70_v42, %v69_v41  ;;  %v90_v45 = vld [vmem:[#allocation2 + $0xc3] ss:$8 sm:$0xf0]  ;;  %v185_v46 = vand.u32 2147483647, %v181_v37  ;;  %v154_v47 = vadd.f32 %v147_v32, %v134_v38  ;;  %v55_v48 = vadd.f32 %v51_v40, %v592_v34 }
  0x32   :  { %v91_v49 = vor.u32 %v90_v45, %v89_v44  ;;  %v109_v50 = vld [vmem:[#allocation2 + $0xc4] ss:$8 sm:$0xf]  ;;  %v129_v52 = vld [vmem:[#allocation2 + $0xc5] ss:$8 sm:$0xf] }
  0x33   :  { %v110_v51 = vld [vmem:[#allocation2 + $0xc4] ss:$8 sm:$0xf0]  ;;  %v189_v53 = vmul.f32 0.5, %v185_v46  ;;  %v174_v54 = vadd.f32 %v167_v39, %v154_v47  ;;  %v75_v55 = vadd.f32 %v71_v43, %v55_v48 }
  0x34   :  { %v111_v27 = vor.u32 %v110_v51, %v109_v50  ;;  %v130_v56 = vld [vmem:[#allocation2 + $0xc5] ss:$8 sm:$0xf0]  ;;  %v149_v57 = vld [vmem:[#allocation2 + $0xc6] ss:$8 sm:$0xf] }
  0x35   :  { %v150_v59 = vld [vmem:[#allocation2 + $0xc6] ss:$8 sm:$0xf0]  ;;  %v193_v60 = vadd.f32 %v189_v53, %v590_v30  ;;  %v598_v62 = vmul.f32 0.125, %v174_v54  ;;  %v95_v63 = vadd.f32 %v91_v49, %v75_v55  ;;  %v131_v0 = vor.u32 %v130_v56, %v129_v52 }
  0x36   :  { %v169_v1 = vld [vmem:[#allocation2 + $0xc7] ss:$8 sm:$0xf]  ;;  %v207_v4 = vld [vmem:[#allocation2 + $0x1] ss:$8 sm:$0xf]  ;;  %v151_v7 = vor.u32 %v150_v59, %v149_v57 }
  0x37   :  { %v170_v3 = vld [vmem:[#allocation2 + $0xc7] ss:$8 sm:$0xf0]  ;;  %199 = vst [vmem:[#allocation5 + $0x40] ss:$8 sm:$0xf] %v193_v60  ;;  %v182_v5 = vsub.f32 %v582_v58, %v598_v62  ;;  %v115_v6 = vadd.f32 %v111_v27, %v95_v63 }
  0x38   :  { %200 = vst [vmem:[#allocation5 + $0x40] ss:$8 sm:$0xf0] %v193_v60  ;;  %v208_v8 = vld [vmem:[#allocation2 + $0x1] ss:$8 sm:$0xf0]  ;;  %v171_v15 = vor.u32 %v170_v3, %v169_v1 }
  0x39   :  { %v210_v9 = vld [vmem:[#allocation2 + $0x41] ss:$8 sm:$0xf]  ;;  %v209_v10 = vor.u32 %v208_v8, %v207_v4  ;;  %v186_v13 = vand.u32 2147483647, %v182_v5  ;;  %v135_v14 = vadd.f32 %v131_v0, %v115_v6 }
  0x3a   :  { %v211_v11 = vld [vmem:[#allocation2 + $0x41] ss:$8 sm:$0xf0]  ;;  %v247_v24 = vld [vmem:[#allocation2 + $0x2] ss:$8 sm:$0xf] }
  0x3b   :  { %v213_v12 = vld [vmem:[#allocation2 + $0x81] ss:$8 sm:$0xf]  ;;  %v212_v16 = vor.u32 %v211_v11, %v210_v9  ;;  %v219_v18 = vsub.f32 %v209_v10, %v584_v61  ;;  %v190_v22 = vmul.f32 0.5, %v186_v13  ;;  %v155_v23 = vadd.f32 %v151_v7, %v135_v14 }
  0x3c   :  { %v214_v17 = vld [vmem:[#allocation2 + $0x81] ss:$8 sm:$0xf0]  ;;  %v248_v28 = vld [vmem:[#allocation2 + $0x2] ss:$8 sm:$0xf0] }
  0x3d   :  { %v215_v19 = vor.u32 %v214_v17, %v213_v12  ;;  %v216_v20 = vld [vmem:[#allocation2 + $0xc1] ss:$8 sm:$0xf]  ;;  %v220_v58 = vsub.f32 %v212_v16, %v590_v30  ;;  %v223_v2 = vand.u32 2147483647, %v219_v18  ;;  %v194_v29 = vadd.f32 %v190_v22, %v598_v62 }
  0x3e   :  { %v217_v21 = vld [vmem:[#allocation2 + $0xc1] ss:$8 sm:$0xf0]  ;;  %v175_v31 = vadd.f32 %v171_v15, %v155_v23  ;;  %v249_v33 = vor.u32 %v248_v28, %v247_v24  ;;  %v250_v35 = vld [vmem:[#allocation2 + $0x42] ss:$8 sm:$0xf] }
  0x3f   :  { %v221_v25 = vsub.f32 %v215_v19, %v598_v62  ;;  %v218_v26 = vor.u32 %v217_v21, %v216_v20  ;;  %v224_v32 = vand.u32 2147483647, %v220_v58  ;;  %v227_v36 = vmul.f32 0.5, %v223_v2  ;;  %v251_v38 = vld [vmem:[#allocation2 + $0x42] ss:$8 sm:$0xf0] }
  0x40   :  { %202 = vst [vmem:[#allocation5 + $0x80] ss:$8 sm:$0xf] %v194_v29  ;;  %203 = vst [vmem:[#allocation5 + $0x80] ss:$8 sm:$0xf0] %v194_v29  ;;  %v259_v41 = vsub.f32 %v249_v33, %v584_v61  ;;  %v252_v42 = vor.u32 %v251_v38, %v250_v35 }
  0x41   :  { %v225_v37 = vand.u32 2147483647, %v221_v25  ;;  %v606_v39 = vmul.f32 0.125, %v175_v31  ;;  %v228_v40 = vmul.f32 0.5, %v224_v32  ;;  %v231_v44 = vadd.f32 %v227_v36, %v584_v61 }
  0x42   :  { %v253_v43 = vld [vmem:[#allocation2 + $0x82] ss:$8 sm:$0xf]  ;;  %v263_v50 = vand.u32 2147483647, %v259_v41  ;;  %v260_v53 = vsub.f32 %v252_v42, %v590_v30 }
  0x43   :  { %v229_v45 = vmul.f32 0.5, %v225_v37  ;;  %v254_v46 = vld [vmem:[#allocation2 + $0x82] ss:$8 sm:$0xf0]  ;;  %v183_v47 = vsub.f32 %v592_v34, %v606_v39  ;;  %v232_v48 = vadd.f32 %v228_v40, %v590_v30  ;;  %v222_v49 = vsub.f32 %v218_v26, %v606_v39 }
  0x44   :  { %v256_v51 = vld [vmem:[#allocation2 + $0xc2] ss:$8 sm:$0xf]  ;;  %236 = vst [vmem:[#allocation5 + $0x1] ss:$8 sm:$0xf] %v231_v44  ;;  %v255_v54 = vor.u32 %v254_v46, %v253_v43 }
  0x45   :  { %237 = vst [vmem:[#allocation5 + $0x1] ss:$8 sm:$0xf0] %v231_v44  ;;  %v233_v52 = vadd.f32 %v229_v45, %v598_v62  ;;  %v257_v55 = vld [vmem:[#allocation2 + $0xc2] ss:$8 sm:$0xf0] }
  0x46   :  { %v287_v27 = vld [vmem:[#allocation2 + $0x3] ss:$8 sm:$0xf]  ;;  %v187_v56 = vand.u32 2147483647, %v183_v47  ;;  %v267_v34 = vmul.f32 0.5, %v263_v50  ;;  %v258_v59 = vor.u32 %v257_v55, %v256_v51  ;;  %v261_v63 = vsub.f32 %v255_v54, %v598_v62 }
  0x47   :  { %239 = vst [vmem:[#allocation5 + $0x41] ss:$8 sm:$0xf] %v232_v48  ;;  %240 = vst [vmem:[#allocation5 + $0x41] ss:$8 sm:$0xf0] %v232_v48 }
  0x48   :  { %v226_v57 = vand.u32 2147483647, %v222_v49  ;;  %242 = vst [vmem:[#allocation5 + $0x81] ss:$8 sm:$0xf] %v233_v52  ;;  %v191_v1 = vmul.f32 0.5, %v187_v56  ;;  %v271_v4 = vadd.f32 %v267_v34, %v584_v61  ;;  %v262_v5 = vsub.f32 %v258_v59, %v606_v39 }
  0x49   :  { %243 = vst [vmem:[#allocation5 + $0x81] ss:$8 sm:$0xf0] %v233_v52  ;;  %v264_v60 = vand.u32 2147483647, %v260_v53 }
  0x4a   :  { %v288_v0 = vld [vmem:[#allocation2 + $0x3] ss:$8 sm:$0xf0]  ;;  %v230_v3 = vmul.f32 0.5, %v226_v57  ;;  %v265_v8 = vand.u32 2147483647, %v261_v63  ;;  %v195_v11 = vadd.f32 %v191_v1, %v606_v39 }
  0x4b   :  { %v290_v6 = vld [vmem:[#allocation2 + $0x43] ss:$8 sm:$0xf]  ;;  %v268_v7 = vmul.f32 0.5, %v264_v60  ;;  %v289_v9 = vor.u32 %v288_v0, %v287_v27  ;;  %v266_v13 = vand.u32 2147483647, %v262_v5 }
  0x4c   :  { %v291_v10 = vld [vmem:[#allocation2 + $0x43] ss:$8 sm:$0xf0]  ;;  %v234_v12 = vadd.f32 %v230_v3, %v606_v39  ;;  %276 = vst [vmem:[#allocation5 + $0x2] ss:$8 sm:$0xf] %v271_v4 }
  0x4d   :  { %277 = vst [vmem:[#allocation5 + $0x2] ss:$8 sm:$0xf0] %v271_v4  ;;  %v292_v14 = vor.u32 %v291_v10, %v290_v6  ;;  %v293_v15 = vld [vmem:[#allocation2 + $0x83] ss:$8 sm:$0xf]  ;;  %v272_v16 = vadd.f32 %v268_v7, %v590_v30  ;;  %v299_v18 = vsub.f32 %v289_v9, %v584_v61 }
  0x4e   :  { %v269_v17 = vmul.f32 0.5, %v265_v8  ;;  %v294_v19 = vld [vmem:[#allocation2 + $0x83] ss:$8 sm:$0xf0]  ;;  %v270_v20 = vmul.f32 0.5, %v266_v13 }
  0x4f   :  { %205 = vst [vmem:[#allocation5 + $0xc0] ss:$8 sm:$0xf] %v195_v11  ;;  %206 = vst [vmem:[#allocation5 + $0xc0] ss:$8 sm:$0xf0] %v195_v11  ;;  %v300_v21 = vsub.f32 %v292_v14, %v590_v30  ;;  %v295_v22 = vor.u32 %v294_v19, %v293_v15 }
  0x50   :  { %245 = vst [vmem:[#allocation5 + $0xc1] ss:$8 sm:$0xf] %v234_v12  ;;  %246 = vst [vmem:[#allocation5 + $0xc1] ss:$8 sm:$0xf0] %v234_v12  ;;  %v273_v58 = vadd.f32 %v269_v17, %v598_v62  ;;  %v274_v25 = vadd.f32 %v270_v20, %v606_v39 }
  0x51   :  { %v296_v23 = vld [vmem:[#allocation2 + $0xc3] ss:$8 sm:$0xf]  ;;  %279 = vst [vmem:[#allocation5 + $0x42] ss:$8 sm:$0xf] %v272_v16  ;;  %v301_v28 = vsub.f32 %v295_v22, %v598_v62 }
  0x52   :  { %280 = vst [vmem:[#allocation5 + $0x42] ss:$8 sm:$0xf0] %v272_v16  ;;  %v303_v24 = vand.u32 2147483647, %v299_v18 }
  0x53   :  { %v297_v2 = vld [vmem:[#allocation2 + $0xc3] ss:$8 sm:$0xf0]  ;;  %v304_v26 = vand.u32 2147483647, %v300_v21 }
  0x54   :  { %v298_v29 = vor.u32 %v297_v2, %v296_v23  ;;  %v327_v31 = vld [vmem:[#allocation2 + $0x4] ss:$8 sm:$0xf]  ;;  %282 = vst [vmem:[#allocation5 + $0x82] ss:$8 sm:$0xf] %v273_v58 }
  0x55   :  { %283 = vst [vmem:[#allocation5 + $0x82] ss:$8 sm:$0xf0] %v273_v58  ;;  %v307_v32 = vmul.f32 0.5, %v303_v24  ;;  %v308_v35 = vmul.f32 0.5, %v304_v26 }
  0x56   :  { %v328_v33 = vld [vmem:[#allocation2 + $0x4] ss:$8 sm:$0xf0]  ;;  %285 = vst [vmem:[#allocation5 + $0xc2] ss:$8 sm:$0xf] %v274_v25  ;;  %v302_v37 = vsub.f32 %v298_v29, %v606_v39 }
  0x57   :  { %286 = vst [vmem:[#allocation5 + $0xc2] ss:$8 sm:$0xf0] %v274_v25  ;;  %v305_v36 = vand.u32 2147483647, %v301_v28  ;;  %v329_v38 = vor.u32 %v328_v33, %v327_v31  ;;  %v311_v41 = vadd.f32 %v307_v32, %v584_v61  ;;  %v312_v44 = vadd.f32 %v308_v35, %v590_v30 }
  0x58   :  { %v330_v40 = vld [vmem:[#allocation2 + $0x44] ss:$8 sm:$0xf]  ;;  %v306_v46 = vand.u32 2147483647, %v302_v37 }
  0x59   :  { %v331_v42 = vld [vmem:[#allocation2 + $0x44] ss:$8 sm:$0xf0]  ;;  %v309_v45 = vmul.f32 0.5, %v305_v36  ;;  %v339_v47 = vsub.f32 %v329_v38, %v584_v61 }
  0x5a   :  { %v333_v43 = vld [vmem:[#allocation2 + $0x84] ss:$8 sm:$0xf]  ;;  %316 = vst [vmem:[#allocation5 + $0x3] ss:$8 sm:$0xf] %v311_v41  ;;  %v332_v49 = vor.u32 %v331_v42, %v330_v40 }
  0x5b   :  { %v334_v48 = vld [vmem:[#allocation2 + $0x84] ss:$8 sm:$0xf0]  ;;  %317 = vst [vmem:[#allocation5 + $0x3] ss:$8 sm:$0xf0] %v311_v41  ;;  %v313_v53 = vadd.f32 %v309_v45, %v598_v62 }
  0x5c   :  { %v335_v50 = vor.u32 %v334_v48, %v333_v43  ;;  %v336_v51 = vld [vmem:[#allocation2 + $0xc4] ss:$8 sm:$0xf]  ;;  %319 = vst [vmem:[#allocation5 + $0x43] ss:$8 sm:$0xf] %v312_v44  ;;  %v340_v57 = vsub.f32 %v332_v49, %v590_v30 }
  0x5d   :  { %v337_v52 = vld [vmem:[#allocation2 + $0xc4] ss:$8 sm:$0xf0]  ;;  %320 = vst [vmem:[#allocation5 + $0x43] ss:$8 sm:$0xf0] %v312_v44 }
  0x5e   :  { %v310_v54 = vmul.f32 0.5, %v306_v46  ;;  %v343_v55 = vand.u32 2147483647, %v339_v47  ;;  %v338_v27 = vor.u32 %v337_v52, %v336_v51  ;;  %v367_v56 = vld [vmem:[#allocation2 + $0x5] ss:$8 sm:$0xf]  ;;  %v341_v34 = vsub.f32 %v335_v50, %v598_v62 }
  0x5f   :  { %v368_v59 = vld [vmem:[#allocation2 + $0x5] ss:$8 sm:$0xf0]  ;;  %322 = vst [vmem:[#allocation5 + $0x83] ss:$8 sm:$0xf] %v313_v53 }
  0x60   :  { %v370_v60 = vld [vmem:[#allocation2 + $0x45] ss:$8 sm:$0xf]  ;;  %323 = vst [vmem:[#allocation5 + $0x83] ss:$8 sm:$0xf0] %v313_v53  ;;  %v314_v63 = vadd.f32 %v310_v54, %v606_v39  ;;  %v342_v1 = vsub.f32 %v338_v27, %v606_v39  ;;  %v369_v3 = vor.u32 %v368_v59, %v367_v56 }
  0x61   :  { %v347_v0 = vmul.f32 0.5, %v343_v55  ;;  %v371_v4 = vld [vmem:[#allocation2 + $0x45] ss:$8 sm:$0xf0]  ;;  %v344_v5 = vand.u32 2147483647, %v340_v57 }
  0x62   :  { %v345_v6 = vand.u32 2147483647, %v341_v34  ;;  %v372_v7 = vor.u32 %v371_v4, %v370_v60  ;;  %325 = vst [vmem:[#allocation5 + $0xc3] ss:$8 sm:$0xf] %v314_v63  ;;  %v379_v10 = vsub.f32 %v369_v3, %v584_v61 }
  0x63   :  { %326 = vst [vmem:[#allocation5 + $0xc3] ss:$8 sm:$0xf0] %v314_v63  ;;  %v351_v8 = vadd.f32 %v347_v0, %v584_v61  ;;  %v346_v9 = vand.u32 2147483647, %v342_v1  ;;  %v348_v12 = vmul.f32 0.5, %v344_v5 }
  0x64   :  { %v373_v11 = vld [vmem:[#allocation2 + $0x85] ss:$8 sm:$0xf]  ;;  %v349_v13 = vmul.f32 0.5, %v345_v6  ;;  %v380_v14 = vsub.f32 %v372_v7, %v590_v30  ;;  %v383_v17 = vand.u32 2147483647, %v379_v10 }
  0x65   :  { %v374_v15 = vld [vmem:[#allocation2 + $0x85] ss:$8 sm:$0xf0]  ;;  %356 = vst [vmem:[#allocation5 + $0x4] ss:$8 sm:$0xf] %v351_v8  ;;  %v352_v20 = vadd.f32 %v348_v12, %v590_v30 }
  0x66   :  { %357 = vst [vmem:[#allocation5 + $0x4] ss:$8 sm:$0xf0] %v351_v8  ;;  %v350_v16 = vmul.f32 0.5, %v346_v9  ;;  %v375_v18 = vor.u32 %v374_v15, %v373_v11  ;;  %v353_v21 = vadd.f32 %v349_v13, %v598_v62  ;;  %v384_v22 = vand.u32 2147483647, %v380_v14 }
  0x67   :  { %v376_v19 = vld [vmem:[#allocation2 + $0xc5] ss:$8 sm:$0xf]  ;;  %v387_v24 = vmul.f32 0.5, %v383_v17 }
  0x68   :  { %v377_v23 = vld [vmem:[#allocation2 + $0xc5] ss:$8 sm:$0xf0]  ;;  %v354_v58 = vadd.f32 %v350_v16, %v606_v39  ;;  %v381_v2 = vsub.f32 %v375_v18, %v598_v62  ;;  %v407_v26 = vld [vmem:[#allocation2 + $0x6] ss:$8 sm:$0xf] }
  0x69   :  { %v378_v25 = vor.u32 %v377_v23, %v376_v19  ;;  %359 = vst [vmem:[#allocation5 + $0x44] ss:$8 sm:$0xf] %v352_v20  ;;  %360 = vst [vmem:[#allocation5 + $0x44] ss:$8 sm:$0xf0] %v352_v20  ;;  %v391_v31 = vadd.f32 %v387_v24, %v584_v61 }
  0x6a   :  { %362 = vst [vmem:[#allocation5 + $0x84] ss:$8 sm:$0xf] %v353_v21  ;;  %363 = vst [vmem:[#allocation5 + $0x84] ss:$8 sm:$0xf0] %v353_v21 }
  0x6b   :  { %v388_v28 = vmul.f32 0.5, %v384_v22  ;;  %v408_v29 = vld [vmem:[#allocation2 + $0x6] ss:$8 sm:$0xf0]  ;;  %v385_v32 = vand.u32 2147483647, %v381_v2  ;;  %v382_v33 = vsub.f32 %v378_v25, %v606_v39 }
  0x6c   :  { %365 = vst [vmem:[#allocation5 + $0xc4] ss:$8 sm:$0xf] %v354_v58  ;;  %366 = vst [vmem:[#allocation5 + $0xc4] ss:$8 sm:$0xf0] %v354_v58  ;;  %v409_v35 = vor.u32 %v408_v29, %v407_v26 }
  0x6d   :  { %v410_v36 = vld [vmem:[#allocation2 + $0x46] ss:$8 sm:$0xf]  ;;  %v392_v37 = vadd.f32 %v388_v28, %v590_v30  ;;  %396 = vst [vmem:[#allocation5 + $0x5] ss:$8 sm:$0xf] %v391_v31 }
  0x6e   :  { %v411_v38 = vld [vmem:[#allocation2 + $0x46] ss:$8 sm:$0xf0]  ;;  %397 = vst [vmem:[#allocation5 + $0x5] ss:$8 sm:$0xf0] %v391_v31  ;;  %v419_v43 = vsub.f32 %v409_v35, %v584_v61 }
  0x6f   :  { %v413_v40 = vld [vmem:[#allocation2 + $0x86] ss:$8 sm:$0xf]  ;;  %v389_v41 = vmul.f32 0.5, %v385_v32  ;;  %v386_v42 = vand.u32 2147483647, %v382_v33  ;;  %v412_v44 = vor.u32 %v411_v38, %v410_v36 }
  0x70   :  { %v414_v45 = vld [vmem:[#allocation2 + $0x86] ss:$8 sm:$0xf0]  ;;  %399 = vst [vmem:[#allocation5 + $0x45] ss:$8 sm:$0xf] %v392_v37 }
  0x71   :  { %400 = vst [vmem:[#allocation5 + $0x45] ss:$8 sm:$0xf0] %v392_v37  ;;  %v415_v46 = vor.u32 %v414_v45, %v413_v40  ;;  %v416_v47 = vld [vmem:[#allocation2 + $0xc6] ss:$8 sm:$0xf]  ;;  %v393_v49 = vadd.f32 %v389_v41, %v598_v62  ;;  %v420_v52 = vsub.f32 %v412_v44, %v590_v30 }
  0x72   :  { %v417_v48 = vld [vmem:[#allocation2 + $0xc6] ss:$8 sm:$0xf0]  ;;  %v390_v50 = vmul.f32 0.5, %v386_v42  ;;  %v423_v51 = vand.u32 2147483647, %v419_v43 }
  0x73   :  { %v447_v53 = vld [vmem:[#allocation2 + $0x7] ss:$8 sm:$0xf]  ;;  %v421_v54 = vsub.f32 %v415_v46, %v598_v62  ;;  %v418_v55 = vor.u32 %v417_v48, %v416_v47  ;;  %402 = vst [vmem:[#allocation5 + $0x85] ss:$8 sm:$0xf] %v393_v49 }
  0x74   :  { %v448_v27 = vld [vmem:[#allocation2 + $0x7] ss:$8 sm:$0xf0]  ;;  %403 = vst [vmem:[#allocation5 + $0x85] ss:$8 sm:$0xf0] %v393_v49  ;;  %v394_v57 = vadd.f32 %v390_v50, %v606_v39 }
  0x75   :  { %v450_v56 = vld [vmem:[#allocation2 + $0x47] ss:$8 sm:$0xf]  ;;  %v427_v34 = vmul.f32 0.5, %v423_v51  ;;  %v424_v59 = vand.u32 2147483647, %v420_v52  ;;  %v449_v60 = vor.u32 %v448_v27, %v447_v53  ;;  %v422_v1 = vsub.f32 %v418_v55, %v606_v39 }
  0x76   :  { %v451_v63 = vld [vmem:[#allocation2 + $0x47] ss:$8 sm:$0xf0]  ;;  %v425_v0 = vand.u32 2147483647, %v421_v54 }
  0x77   :  { %v452_v3 = vor.u32 %v451_v63, %v450_v56  ;;  %v453_v4 = vld [vmem:[#allocation2 + $0x87] ss:$8 sm:$0xf]  ;;  %405 = vst [vmem:[#allocation5 + $0xc5] ss:$8 sm:$0xf] %v394_v57  ;;  %v431_v5 = vadd.f32 %v427_v34, %v584_v61  ;;  %v459_v7 = vsub.f32 %v449_v60, %v584_v61 }
  0x78   :  { %406 = vst [vmem:[#allocation5 + $0xc5] ss:$8 sm:$0xf0] %v394_v57  ;;  %v428_v6 = vmul.f32 0.5, %v424_v59  ;;  %v429_v9 = vmul.f32 0.5, %v425_v0 }
  0x79   :  { %v454_v8 = vld [vmem:[#allocation2 + $0x87] ss:$8 sm:$0xf0]  ;;  %v426_v10 = vand.u32 2147483647, %v422_v1  ;;  %v460_v11 = vsub.f32 %v452_v3, %v590_v30 }
  0x7a   :  { %v455_v12 = vor.u32 %v454_v8, %v453_v4  ;;  %v456_v13 = vld [vmem:[#allocation2 + $0xc7] ss:$8 sm:$0xf]  ;;  %436 = vst [vmem:[#allocation5 + $0x6] ss:$8 sm:$0xf] %v431_v5  ;;  %v432_v14 = vadd.f32 %v428_v6, %v590_v30  ;;  %v433_v17 = vadd.f32 %v429_v9, %v598_v62 }
  0x7b   :  { %437 = vst [vmem:[#allocation5 + $0x6] ss:$8 sm:$0xf0] %v431_v5  ;;  %v463_v15 = vand.u32 2147483647, %v459_v7  ;;  %v430_v18 = vmul.f32 0.5, %v426_v10 }
  0x7c   :  { %v457_v16 = vld [vmem:[#allocation2 + $0xc7] ss:$8 sm:$0xf0]  ;;  %v464_v19 = vand.u32 2147483647, %v460_v11  ;;  %v461_v20 = vsub.f32 %v455_v12, %v598_v62 }
  0x7d   :  { %439 = vst [vmem:[#allocation5 + $0x46] ss:$8 sm:$0xf] %v432_v14  ;;  %440 = vst [vmem:[#allocation5 + $0x46] ss:$8 sm:$0xf0] %v432_v14  ;;  %v458_v22 = vor.u32 %v457_v16, %v456_v13  ;;  %v434_v23 = vadd.f32 %v430_v18, %v606_v39 }
  0x7e   :  { %v467_v21 = vmul.f32 0.5, %v463_v15  ;;  %442 = vst [vmem:[#allocation5 + $0x86] ss:$8 sm:$0xf] %v433_v17  ;;  %v468_v58 = vmul.f32 0.5, %v464_v19 }
  0x7f   :  { %443 = vst [vmem:[#allocation5 + $0x86] ss:$8 sm:$0xf0] %v433_v17  ;;  %v465_v24 = vand.u32 2147483647, %v461_v20  ;;  %v462_v25 = vsub.f32 %v458_v22, %v606_v39 }
  0x80   :  { %v471_v2 = vadd.f32 %v467_v21, %v584_v61  ;;  %445 = vst [vmem:[#allocation5 + $0xc6] ss:$8 sm:$0xf] %v434_v23  ;;  %446 = vst [vmem:[#allocation5 + $0xc6] ss:$8 sm:$0xf0] %v434_v23  ;;  %v472_v26 = vadd.f32 %v468_v58, %v590_v30 }
  0x81   :  { %v469_v28 = vmul.f32 0.5, %v465_v24  ;;  %v466_v29 = vand.u32 2147483647, %v462_v25 }
  0x82   :  { %476 = vst [vmem:[#allocation5 + $0x7] ss:$8 sm:$0xf] %v471_v2  ;;  %477 = vst [vmem:[#allocation5 + $0x7] ss:$8 sm:$0xf0] %v471_v2 }
  0x83   :  { %479 = vst [vmem:[#allocation5 + $0x47] ss:$8 sm:$0xf] %v472_v26  ;;  %480 = vst [vmem:[#allocation5 + $0x47] ss:$8 sm:$0xf0] %v472_v26  ;;  %v473_v31 = vadd.f32 %v469_v28, %v598_v62 }
  0x84   :  { %v470_v32 = vmul.f32 0.5, %v466_v29 }
  0x85   :  { %482 = vst [vmem:[#allocation5 + $0x87] ss:$8 sm:$0xf] %v473_v31  ;;  %483 = vst [vmem:[#allocation5 + $0x87] ss:$8 sm:$0xf0] %v473_v31 }
  0x86   :  { %v474_v61 = vadd.f32 %v470_v32, %v606_v39 }
  0x88   :  { %485 = vst [vmem:[#allocation5 + $0xc7] ss:$8 sm:$0xf] %v474_v61  ;;  %486 = vst [vmem:[#allocation5 + $0xc7] ss:$8 sm:$0xf0] %v474_v61 }
  0x89   :  { %537 = shalt.err (!%p534_p12)
}
  0x8a   :  { %s538_s22 = scalar_lea.hbm %s677_s1, 4096 }
  0x8b   :  { %p539_p13 = scmp.ne.s32.totalorder %s677_s1, %s538_s22  ;;  %p542_p0 = scmp.lt.u32.totalorder %s538_s22, %s677_s1 }
  0x8d   :  { %p544_p1 = pnand %p542_p0, %p539_p13 }
  0x8f   :  { %547 = shalt.err (!%p544_p1)
}
  0x90   :  { %496 = dma.vmem_to_hbm [thread:$0]  %s494_s18, 4096, %s677_s1, [#allocation4]  }
  0x91   :  { %550 = dma.done.wait [#allocation4], 4096  }
  0x92   :  { %551 = vsyncadd [#allocation4], 4294963200 }
  0x93   :  { %500 = vsyncpa [#allocation3], 1 }
  0x94   :  { %501 = vsyncpa [#allocation4], 1 }

</bundles_post_ra>
